<compile_context>
chip_gen: v7x
topology: tpu7x:2x2x1
jax: 0.10.0
libtpu: 0.0.40
codegen_flags: <defaults>
</compile_context>

<pallas_src>
import functools

import jax
import jax.numpy as jnp
from jax import lax
from jax.experimental import pallas as pl
from jax.experimental.pallas import tpu as pltpu


def _round_up(x: int, m: int) -> int:
    return (x + m - 1) // m * m


# ----------------------------------------------------------------------------
# Kernels
# ----------------------------------------------------------------------------
def _resident_kernel(fushed_ref, ct_ref, labels_ref, partial_ref, *,
                     true_b, true_k, tile_b, k_padded, b_padded):
    """1-D grid over B blocks; centroid.T fully resident in VMEM (Kp lane-dense)."""
    b = pl.program_id(0)

    # [tile_b, Kp] scores on the MXU, f32 accumulation.
    s = jnp.dot(fushed_ref[...], ct_ref[...], preferred_element_type=jnp.float32)

    col = lax.broadcasted_iota(jnp.int32, s.shape, 1)          # [tile_b, Kp]
    is_lab = col == labels_ref[...]                            # labels: [tile_b, 1]

    # Reference subtracts 0.001 at the label column BEFORE both the gather and
    # the logsumexp -> single fused select.
    s = jnp.where(is_lab, s - 0.001, s)

    if k_padded != true_k:
        # Padded K columns: large negative finite value (exp underflows to 0).
        # Pad-row labels are -1 so they never collide with this mask.
        s = jnp.where(col < true_k, s, jnp.float32(-1e30))

    nominator = jnp.sum(jnp.where(is_lab, s, 0.0), axis=1, keepdims=True)  # [tile_b, 1]

    m = jnp.max(s, axis=1, keepdims=True)
    denominator = m + jnp.log(jnp.sum(jnp.exp(s - m), axis=1, keepdims=True))

    per_row = denominator - nominator
    if b_padded != true_b:
        row = b * tile_b + lax.broadcasted_iota(jnp.int32, per_row.shape, 0)
        per_row = jnp.where(row < true_b, per_row, 0.0)        # drop pad rows
    partial_ref[0, 0] = jnp.sum(per_row)


def _tiled_kernel(fushed_ref, ct_ref, labels_ref, partial_ref,
                  m_sc, l_sc, nom_sc, *,
                  true_b, true_k, tile_b, tile_k, k_padded, b_padded):
    """Fallback: 2-D grid (B parallel, K arbitrary/last) with online logsumexp."""
    b = pl.program_id(0)
    k = pl.program_id(1)

    @pl.when(k == 0)
    def _init():
        m_sc[...] = jnp.full_like(m_sc, -1e30)   # finite sentinel avoids inf*0 NaNs
        l_sc[...] = jnp.zeros_like(l_sc)
        nom_sc[...] = jnp.zeros_like(nom_sc)

    s = jnp.dot(fushed_ref[...], ct_ref[...], preferred_element_type=jnp.float32)

    col = k * tile_k + lax.broadcasted_iota(jnp.int32, s.shape, 1)
    is_lab = col == labels_ref[...]
    s = jnp.where(is_lab, s - 0.001, s)

    if k_padded != true_k:
        # Only the last K tile actually contains padded columns; the select is a
        # no-op for earlier tiles and is elided entirely when K % 128 == 0.
        # NOTE: tiling guarantees every K tile holds >= 1 real column, so the
        # -1e30 sentinel can never dominate a tile's running max.
        s = jnp.where(col < true_k, s, jnp.float32(-1e30))

    # The label column lives in exactly one K tile -> accumulated masked sum
    # equals S[b, label].
    nom_sc[...] += jnp.sum(jnp.where(is_lab, s, 0.0), axis=1, keepdims=True)

    m_prev = m_sc[...]
    m_new = jnp.maximum(m_prev, jnp.max(s, axis=1, keepdims=True))
    l_sc[...] = (l_sc[...] * jnp.exp(m_prev - m_new)
                 + jnp.sum(jnp.exp(s - m_new), axis=1, keepdims=True))
    m_sc[...] = m_new

    @pl.when(k == pl.num_programs(1) - 1)
    def _finalize():
        denominator = m_sc[...] + jnp.log(l_sc[...])
        per_row = denominator - nom_sc[...]
        if b_padded != true_b:
            row = b * tile_b + lax.broadcasted_iota(jnp.int32, per_row.shape, 0)
            per_row = jnp.where(row < true_b, per_row, 0.0)
        partial_ref[0, 0] = jnp.sum(per_row)


# ----------------------------------------------------------------------------
# Wrapper
# ----------------------------------------------------------------------------
def clustering_loss(fushed, centroid, labels, nce: int = 1, *,
                    matmul_dtype=jnp.float32,
                    _debug_force_tiled_k=None):
    """Pallas implementation of ClusteringLoss.forward for outputs=(fushed, centroid, labels).

    nce==0 (nll_loss of log_softmax) is numerically identical to the nce==1 branch,
    so both map to the same kernel.
    matmul_dtype=jnp.bfloat16 is the bandwidth/MXU fast path (f32 accumulation);
    the default f32 matches the PyTorch numerics exactly.
    """
    del nce
    B, D = fushed.shape
    K, D_c = centroid.shape
    assert D == D_c

    itemsize = jnp.dtype(matmul_dtype).itemsize
    labels_b = labels[-B:].astype(jnp.int32)          # last B labels, as in PyTorch

    # ---- host-side layout plumbing (done once, in HBM) ------------------------
    f = fushed.astype(matmul_dtype)
    ct = centroid.astype(matmul_dtype).T              # [D, K]: K becomes lane-major
    Dp = _round_up(D, 128)                            # aligned contraction dim
    if Dp != D:
        f = jnp.pad(f, ((0, 0), (0, Dp - D)))
        ct = jnp.pad(ct, ((0, Dp - D), (0, 0)))
    kp = _round_up(K, 128)                            # lane-dense K
    if kp != K:
        ct = jnp.pad(ct, ((0, 0), (0, kp - K)))

    # ---- generation-aware VMEM budget ------------------------------------------
    phys_vmem = 64 * 1024 * 1024                      # conservative default (v7x)
    try:
        phys_vmem = getattr(pltpu.get_tpu_info(), "vmem_capacity_bytes", phys_vmem)
    except Exception:
        pass
    # v5e/v6e (128 MiB) -> 96 MiB scoped limit; v7x (64 MiB) -> 48 MiB.
    vmem_limit = max(32 * 1024 * 1024, min(96 * 1024 * 1024, (phys_vmem * 3) // 4))
    budget = (vmem_limit * 3) // 4                    # headroom for compiler scratch

    # ---- tile_b: big (<=256), but split B so both v7x TensorCores get work -----
    rb = _round_up(B, 8)
    tile_b = min(256, rb)
    if tile_b == rb and B > 8:
        half = _round_up((B + 1) // 2, 8)
        if half < rb:
            tile_b = half                             # n_b >= 2

    def _resident_bytes(tb):
        return (2 * Dp * kp * itemsize                # centroid.T (double-buffered slot)
                + 2 * tb * Dp * itemsize              # fushed tile (double-buffered)
                + 4 * tb * kp * 4)                    # f32 score tile + exp/select temps

    def _tiled_bytes(tb, tk):
        return (2 * Dp * tk * itemsize + 2 * tb * Dp * itemsize + 4 * tb * tk * 4)

    # shrink tile_b until the resident-centroid path fits
    tb = tile_b
    while tb > 8 and _resident_bytes(tb) > budget:
        tb = max(8, _round_up(tb // 2, 8))
    use_resident = (_debug_force_tiled_k is None) and (_resident_bytes(tb) <= budget)

    compiler_params = dict(vmem_limit_bytes=int(vmem_limit))

    if use_resident:
        # ---------------- resident-centroid fast path (1-D grid over B) --------
        tile_b = tb
        bp = _round_up(B, tile_b)
        n_b = bp // tile_b
        if bp != B:
            f = jnp.pad(f, ((0, bp - B), (0, 0)))
            labels_b = jnp.pad(labels_b, (0, bp - B), constant_values=-1)
        labels_2d = labels_b.reshape(bp, 1)

        kernel = functools.partial(
            _resident_kernel, true_b=B, true_k=K, tile_b=tile_b,
            k_padded=kp, b_padded=bp)

        partials = pl.pallas_call(
            kernel,
            out_shape=jax.ShapeDtypeStruct((n_b, 1), jnp.float32),
            grid_spec=pltpu.PrefetchScalarGridSpec(
                num_scalar_prefetch=0,
                grid=(n_b,),
                in_specs=[
                    pl.BlockSpec((tile_b, Dp), lambda b: (b, 0)),   # fushed tile
                    pl.BlockSpec((Dp, kp), lambda b: (0, 0)),       # centroid.T: resident
                    pl.BlockSpec((tile_b, 1), lambda b: (b, 0)),    # labels per B block
                ],
                out_specs=pl.BlockSpec((1, 1), lambda b: (b, 0),
                                       memory_space=pltpu.MemorySpace.SMEM),
            ),
            compiler_params=pltpu.CompilerParams(
                dimension_semantics=("parallel",), **compiler_params),
        )(f, ct, labels_2d)
    else:
        # ---------------- K-tiled online-logsumexp fallback ---------------------
        if _debug_force_tiled_k is not None:
            tile_k = _round_up(min(max(int(_debug_force_tiled_k), 1), kp), 128)
        else:
            tile_k = kp
        while tile_k > 128 and _tiled_bytes(tile_b, tile_k) > budget:
            tile_k = max(128, _round_up(tile_k // 2, 128))
        while tile_b > 8 and _tiled_bytes(tile_b, tile_k) > budget:
            tile_b = max(8, _round_up(tile_b // 2, 8))

        kp_t = _round_up(kp, tile_k)
        if kp_t != kp:
            ct = jnp.pad(ct, ((0, 0), (0, kp_t - kp)))
        bp = _round_up(B, tile_b)
        n_b = bp // tile_b
        n_k = kp_t // tile_k
        # every K tile must contain >= 1 real column (the -1e30 sentinel relies on it)
        assert (n_k - 1) * tile_k < K
        if bp != B:
            f = jnp.pad(f, ((0, bp - B), (0, 0)))
            labels_b = jnp.pad(labels_b, (0, bp - B), constant_values=-1)
        labels_2d = labels_b.reshape(bp, 1)

        kernel = functools.partial(
            _tiled_kernel, true_b=B, true_k=K, tile_b=tile_b, tile_k=tile_k,
            k_padded=kp_t, b_padded=bp)

        partials = pl.pallas_call(
            kernel,
            out_shape=jax.ShapeDtypeStruct((n_b, 1), jnp.float32),
            grid_spec=pltpu.PrefetchScalarGridSpec(
                num_scalar_prefetch=0,
                grid=(n_b, n_k),
                in_specs=[
                    pl.BlockSpec((tile_b, Dp), lambda b, k: (b, 0)),     # fushed tile
                    pl.BlockSpec((Dp, tile_k), lambda b, k: (0, k)),     # centroid.T tile
                    pl.BlockSpec((tile_b, 1), lambda b, k: (b, 0)),      # labels per B block
                ],
                out_specs=pl.BlockSpec((1, 1), lambda b, k: (b, 0),
                                       memory_space=pltpu.MemorySpace.SMEM),
                scratch_shapes=[
                    pltpu.VMEM((tile_b, 1), jnp.float32),   # running max m
                    pltpu.VMEM((tile_b, 1), jnp.float32),   # running sum l
                    pltpu.VMEM((tile_b, 1), jnp.float32),   # nominator accumulator
                ],
            ),
            compiler_params=pltpu.CompilerParams(
                dimension_semantics=("parallel", "arbitrary"), **compiler_params),
        )(f, ct, labels_2d)

    return jnp.sum(partials) / jnp.float32(B)


# ----------------------------------------------------------------------------
# Pure-JAX reference (mirrors the PyTorch module) and self-test
# ----------------------------------------------------------------------------
def _reference_loss(fushed, centroid, labels):
    B = fushed.shape[0]
    lab = labels[-B:]
    S = fushed @ centroid.T
    target = jax.nn.one_hot(lab, centroid.shape[0], dtype=jnp.float32)
    S = S - target * 0.001
    nominator = jnp.sum(S * target, axis=1)
    denominator = jax.scipy.special.logsumexp(S, axis=1)
    return jnp.mean(denominator - nominator)


if __name__ == "__main__":
    key = jax.random.PRNGKey(0)
    k1, k2, k3 = jax.random.split(key, 3)

    # small shapes consistent with the module: batch=8, feature dim=32, 16 centroids
    B, D, K = 8, 32, 16
    L = B + 4                      # labels buffer longer than batch (last B used)
    fushed = jax.random.normal(k1, (B, D), dtype=jnp.float32)
    centroid = jax.random.normal(k2, (K, D), dtype=jnp.float32)
    labels = jax.random.randint(k3, (L,), 0, K, dtype=jnp.int32)

    ref = _reference_loss(fushed, centroid, labels)

    # exact f32 path (resident-centroid kernel) — matches PyTorch numerics
    loss = jax.block_until_ready(clustering_loss(fushed, centroid, labels, nce=1))
    assert jnp.allclose(loss, ref, atol=1e-5, rtol=1e-5), (loss, ref)

    # bf16 MXU-operand fast path (f32 accumulation), looser tolerance
    loss_bf16 = jax.block_until_ready(
        clustering_loss(fushed, centroid, labels, nce=1, matmul_dtype=jnp.bfloat16))
    assert jnp.allclose(loss_bf16, ref, atol=5e-2, rtol=5e-2), (loss_bf16, ref)

    # K-tiled online-logsumexp fallback + split-B parallel axis + D/K padding coverage
    B2, D2, K2 = 32, 40, 300
    kk1, kk2, kk3 = jax.random.split(jax.random.PRNGKey(0), 3)
    f2 = jax.random.normal(kk1, (B2, D2), dtype=jnp.float32)
    c2 = jax.random.normal(kk2, (K2, D2), dtype=jnp.float32)
    l2 = jax.random.randint(kk3, (B2 + 3,), 0, K2, dtype=jnp.int32)
    ref2 = _reference_loss(f2, c2, l2)
    loss2 = jax.block_until_ready(
        clustering_loss(f2, c2, l2, nce=1, _debug_force_tiled_k=128))
    assert jnp.allclose(loss2, ref2, atol=1e-4, rtol=1e-4), (loss2, ref2)

    print("KERNEL_OK")
</pallas_src>

<mosaic_0001>
module attributes {stable_mosaic.version = 11 : i64} {
  func.func @_resident_kernel(%arg0: i32, %arg1: memref<8x128xf32, #tpu.memory_space<vmem>>, %arg2: memref<128x128xf32, #tpu.memory_space<vmem>>, %arg3: memref<8x1xi32, #tpu.memory_space<vmem>>, %arg4: memref<1x1xf32, #tpu.memory_space<smem>>) attributes {dimension_semantics = [#tpu.dimension_semantics<parallel>], iteration_bounds = array<i64: 1>, scalar_prefetch = 0 : i64, scratch_operands = 0 : i64, tpu.core_type = #tpu.core_type<tc>, window_params = [{transform_indices = @transform_0, window_bounds = array<i64: 8, 128>}, {pipeline_mode = #tpu.pipeline_mode<synchronous>, transform_indices = @transform_1, window_bounds = array<i64: 128, 128>}, {transform_indices = @transform_2, window_bounds = array<i64: 8, 1>}, {transform_indices = @transform_3, window_bounds = array<i64: 1, 1>}]} {
    %c0 = arith.constant 0 : index
    %c0_0 = arith.constant 0 : index
    %0 = vector.load %arg1[%c0, %c0_0] : memref<8x128xf32, #tpu.memory_space<vmem>>, vector<8x128xf32>
    %c0_1 = arith.constant 0 : index
    %c0_2 = arith.constant 0 : index
    %1 = vector.load %arg2[%c0_1, %c0_2] : memref<128x128xf32, #tpu.memory_space<vmem>>, vector<128x128xf32>
    %cst = arith.constant dense<0.000000e+00> : vector<8x128xf32>
    %2 = tpu.matmul %0, %1, %cst {dimension_numbers = #tpu.dot_dimension_numbers<[1], [0], [0], [1], [0, 0, 1, 1], [], []>} : vector<8x128xf32>, vector<128x128xf32>, vector<8x128xf32> -> vector<8x128xf32>
    %3 = tpu.iota {dimensions = array<i32: 1>} : vector<8x128xi32>
    %c0_3 = arith.constant 0 : index
    %c0_4 = arith.constant 0 : index
    %4 = vector.load %arg3[%c0_3, %c0_4] : memref<8x1xi32, #tpu.memory_space<vmem>>, vector<8x1xi32>
    %5 = vector.broadcast %4 : vector<8x1xi32> to vector<8x128xi32>
    %6 = arith.cmpi eq, %3, %5 : vector<8x128xi32>
    %cst_5 = arith.constant 1.000000e-03 : f32
    %7 = vector.broadcast %cst_5 : f32 to vector<8x128xf32>
    %8 = arith.subf %2, %7 : vector<8x128xf32>
    %9 = arith.select %6, %8, %2 : vector<8x128xi1>, vector<8x128xf32>
    %c16_i32 = arith.constant 16 : i32
    %10 = vector.broadcast %c16_i32 : i32 to vector<8x128xi32>
    %11 = arith.cmpi slt, %3, %10 : vector<8x128xi32>
    %cst_6 = arith.constant -1.000000e+30 : f32
    %12 = vector.broadcast %cst_6 : f32 to vector<8x128xf32>
    %13 = arith.select %11, %9, %12 : vector<8x128xi1>, vector<8x128xf32>
    %cst_7 = arith.constant 0.000000e+00 : f32
    %14 = vector.broadcast %cst_7 : f32 to vector<8x128xf32>
    %15 = arith.select %6, %13, %14 : vector<8x128xi1>, vector<8x128xf32>
    %cst_8 = arith.constant dense<0.000000e+00> : vector<8xf32>
    %16 = vector.multi_reduction <add>, %15, %cst_8 [1] : vector<8x128xf32> to vector<8xf32>
    %17 = vector.shape_cast %16 : vector<8xf32> to vector<8x1xf32>
    %cst_9 = arith.constant dense<0xFF800000> : vector<8xf32>
    %18 = vector.multi_reduction <maximumf>, %13, %cst_9 [1] : vector<8x128xf32> to vector<8xf32>
    %19 = vector.shape_cast %18 : vector<8xf32> to vector<8x1xf32>
    %20 = vector.broadcast %19 : vector<8x1xf32> to vector<8x128xf32>
    %21 = arith.subf %13, %20 : vector<8x128xf32>
    %22 = math.exp %21 : vector<8x128xf32>
    %cst_10 = arith.constant dense<0.000000e+00> : vector<8xf32>
    %23 = vector.multi_reduction <add>, %22, %cst_10 [1] : vector<8x128xf32> to vector<8xf32>
    %24 = vector.shape_cast %23 : vector<8xf32> to vector<8x1xf32>
    %25 = math.log %24 : vector<8x1xf32>
    %26 = arith.addf %19, %25 : vector<8x1xf32>
    %27 = arith.subf %26, %17 : vector<8x1xf32>
    %28 = vector.shape_cast %27 : vector<8x1xf32> to vector<1x8x1xf32>
    %cst_11 = arith.constant dense<0.000000e+00> : vector<1xf32>
    %29 = vector.multi_reduction <add>, %28, %cst_11 [1, 2] : vector<1x8x1xf32> to vector<1xf32>
    %30 = vector.shape_cast %29 : vector<1xf32> to vector<1x1x1xf32>
    %31 = vector.extract %30[0, 0, 0] : f32 from vector<1x1x1xf32>
    %c0_12 = arith.constant 0 : index
    %c0_13 = arith.constant 0 : index
    %32 = memref.load %arg4[%c0_12, %c0_13] : memref<1x1xf32, #tpu.memory_space<smem>>
    memref.store %31, %arg4[%c0_12, %c0_13] : memref<1x1xf32, #tpu.memory_space<smem>>
    return
  }
  func.func @transform_0(%arg0: i32) -> (i32, i32) {
    %c0_i32 = arith.constant 0 : i32
    %c0_i32_0 = arith.constant 0 : i32
    return %arg0, %c0_i32 : i32, i32
  }
  func.func @transform_1(%arg0: i32) -> (i32, i32) {
    %c0_i32 = arith.constant 0 : i32
    %c0_i32_0 = arith.constant 0 : i32
    %c0_i32_1 = arith.constant 0 : i32
    return %c0_i32, %c0_i32_0 : i32, i32
  }
  func.func @transform_2(%arg0: i32) -> (i32, i32) {
    %c0_i32 = arith.constant 0 : i32
    %c0_i32_0 = arith.constant 0 : i32
    return %arg0, %c0_i32 : i32, i32
  }
  func.func @transform_3(%arg0: i32) -> (i32, i32) {
    %c0_i32 = arith.constant 0 : i32
    %c0_i32_0 = arith.constant 0 : i32
    return %arg0, %c0_i32 : i32, i32
  }
}

</mosaic_0001>

<bundles_post_ra>
// kernel: tpu_custom_call.1
= control target key start
LH: loop header
LB: loop body
LE: loop exit
PB: predicated region body
PF: predicated region fallthrough
CT: control target
= control target key end

     0   :  { %8 = vsyncpa [#allocation3], 0  ;;  %s354_s0 = inlined_call_operand.vmem [shape: f32[8,128], index: 0, kind: input, shape index: {}]   ;;  %s355_s1 = inlined_call_operand.hbm [shape: f32[128,128], index: 1, kind: input, shape index: {}]   ;;  %s356_s2 = inlined_call_operand.vmem [shape: s32[8,1], index: 2, kind: input, shape index: {}]   ;;  %s357_s3 = inlined_call_operand.hbm [shape: f32[1,1], index: 3, kind: output, shape index: {}]  }
   0x1   :  { %9 = vsyncpa [#allocation4], 0  ;;  %s296_s12 = smov [#allocation2]   ;;  %s260_s16 = scalar_lea.hbm %s355_s1, 2048 }
   0x2   :  { %s17_s13 = sshll.u32 %s296_s12, 4  ;;  %p261_p0 = scmp.ne.s32.totalorder %s355_s1, %s260_s16  ;;  %s18_s13 = int_to_ptr.vmem [resolvable:$true] %s17_s13 }
   0x3   :  { %p264_p1 = scmp.lt.u32.totalorder %s260_s16, %s355_s1 }
   0x5   :  { %p266_p2 = pnand %p264_p1, %p261_p0 }
   0x7   :  { %269 = shalt.err (!%p266_p2)
}
   0x8   :  { %s270_s21 = scalar_lea.vmem %s18_s13, 2048  ;;  %p275_p4 = scmp.lt.s32.totalorder %s18_s13, %s18_s13 }
   0x9   :  { %p271_p3 = scmp.ne.s32.totalorder %s18_s13, %s270_s21  ;;  %p276_p5 = scmp.lt.s32.totalorder %s270_s21, %s270_s21 }
   0xb   :  { %p277_p6 = por %p276_p5, %p275_p4 }
   0xd   :  { %p278_p7 = pnand %p277_p6, %p271_p3 }
   0xf   :  { %281 = shalt.err (!%p278_p7)
}
  0x10   :  { %s297_s22 = smov 128   ;;  %s298_s23 = smov 8  }
  0x11   :  { %23 = dma.hbm_to_vmem [thread:$0]  %s355_s1, 2048, %s18_s13, [#allocation3], %s297_s22, %s297_s22, %s298_s23  }
  0x12   :  { %292 = dma.done.wait [#allocation3], 2048  }
  0x13   :  { %293 = vsyncadd [#allocation3], 4294965248  ;;  %v299_v0 = vmov 0.0|0.0   ;;  %vm300_vm0 = vmmov 0   ;;  %v301_v1 = vmov 0.0   ;;  %v302_v2 = vmov 0  }
  0x14   :  { %221 = vmatprep.subr.bf16.mxu0 %v299_v0  ;;  %218 = vmatprep.mubr.msk.f32.mxu0 %vm300_vm0, %v301_v1  ;;  %v30_v3 = vld [vmem:[#allocation2] sm:$0xff]  ;;  %v31_v4 = vld [vmem:[#allocation2 + $0x8] sm:$0xff]  ;;  %v32_v5 = vld [vmem:[#allocation2 + $0x10] sm:$0xff]  ;;  %v116_v29 = vlaneseq  ;;  %vm141_vm3 = vcmask 7168   ;;  %s282_s30 = scalar_lea.hbm %s357_s3, 16 }
  0x15   :  { %255 = vset.pattern.permute.xlu0 %v302_v2  ;;  %v222_v6 = vpack.c.bf16 %v31_v4, %v30_v3  ;;  %v33_v7 = vld [vmem:[#allocation2 + $0x18] sm:$0xff]  ;;  %v34_v9 = vld [vmem:[#allocation2 + $0x20] sm:$0xff]  ;;  %v35_v10 = vld [vmem:[#allocation2 + $0x28] sm:$0xff]  ;;  %p283_p8 = scmp.ne.s32.totalorder %s357_s3, %s282_s30  ;;  %p286_p9 = scmp.lt.u32.totalorder %s282_s30, %s357_s3 }
  0x16   :  { %v225_v8 = vpack.c.bf16 %v33_v7, %v32_v5  ;;  %v118_v11 = vld [vmem:[%s356_s2] sm:$0xff]  ;;  %v228_v12 = vpack.c.bf16 %v35_v10, %v34_v9  ;;  %v36_v13 = vld [vmem:[#allocation2 + $0x30] sm:$0xff]  ;;  %v37_v14 = vld [vmem:[#allocation2 + $0x38] sm:$0xff]  ;;  %v117_v30 = vand.u32 127, %v116_v29 }
  0x17   :  { %223 = vmatpush3.bf16.msra.mxu0 %v222_v6  ;;  %120 = vperm.xlu0 %255, %v118_v11   ;;  %v231_v15 = vpack.c.bf16 %v37_v14, %v36_v13  ;;  %v38_v16 = vld [vmem:[#allocation2 + $0x40] sm:$0xff]  ;;  %v39_v17 = vld [vmem:[#allocation2 + $0x48] sm:$0xff]  ;;  %v40_v19 = vld [vmem:[#allocation2 + $0x50] sm:$0xff]  ;;  %p288_p10 = pnand %p286_p9, %p283_p8 }
  0x18   :  { %224 = vmatprep.subr.bf16.mxu0 %v299_v0  ;;  %v234_v18 = vpack.c.bf16 %v39_v17, %v38_v16  ;;  %v41_v20 = vld [vmem:[#allocation2 + $0x58] sm:$0xff]  ;;  %v42_v22 = vld [vmem:[#allocation2 + $0x60] sm:$0xff]  ;;  %v43_v23 = vld [vmem:[#allocation2 + $0x68] sm:$0xff]  ;;  %vm125_vm2 = vcmp.lt.s32.totalorder %v117_v30, 16 }
  0x19   :  { %v237_v21 = vpack.c.bf16 %v41_v20, %v40_v19  ;;  %v240_v24 = vpack.c.bf16 %v43_v23, %v42_v22  ;;  %v44_v25 = vld [vmem:[#allocation2 + $0x70] sm:$0xff]  ;;  %v45_v26 = vld [vmem:[#allocation2 + $0x78] sm:$0xff]  ;;  %v29_v28 = vld [vmem:[%s354_s0] sm:$0xff] }
  0x1a   :  { %v243_v27 = vpack.c.bf16 %v45_v26, %v44_v25 }
  0x1b   :  { %226 = vmatpush3.bf16.msra.mxu0 %v225_v8 }
  0x1c   :  { %227 = vmatprep.subr.bf16.mxu0 %v299_v0 }
  0x1f   :  { %229 = vmatpush3.bf16.msra.mxu0 %v228_v12 }
  0x20   :  { %230 = vmatprep.subr.bf16.mxu0 %v299_v0 }
  0x23   :  { %232 = vmatpush3.bf16.msra.mxu0 %v231_v15 }
  0x24   :  { %233 = vmatprep.subr.bf16.mxu0 %v299_v0 }
  0x27   :  { %235 = vmatpush3.bf16.msra.mxu0 %v234_v18 }
  0x28   :  { %236 = vmatprep.subr.bf16.mxu0 %v299_v0 }
  0x2b   :  { %238 = vmatpush3.bf16.msra.mxu0 %v237_v21 }
  0x2c   :  { %239 = vmatprep.subr.bf16.mxu0 %v299_v0 }
  0x2f   :  { %241 = vmatpush3.bf16.msra.mxu0 %v240_v24 }
  0x30   :  { %242 = vmatprep.subr.bf16.mxu0 %v299_v0 }
  0x33   :  { %244 = vmatpush3.bf16.msra.mxu0 %v243_v27 }
  0x36   :  { %219 = vmatmul.mubr.f32.vlgmr.msra.gmra.mrb[0].mxu0 %v29_v28 }
  0x96   :  { %v121_v31 = vpop.permute.xlu0 %120 }
  0x97   :  { %vm122_vm1 = vcmp.eq.s32.totalorder %v117_v30, %v121_v31 }
 0x109   :  { %v112_v32 = vpop.f32.mrb[0].mxu0 }
 0x10a   :  { %v168_v33 = vadd.f32 -0.001, %v112_v32  ;;  %v220_v34 = vpop.f32.mrb[1].mxu0 }
 0x10c   :  { %v124_v35 = vsel %vm122_vm1, %v168_v33, %v112_v32 }
 0x10d   :  { %v126_v36 = vsel %vm125_vm2, %v124_v35, -1e+30 }
 0x10e   :  { %130 = vmax.xlane.f32.xlu0 %v126_v36  ;;  %v127_v41 = vsel %vm122_vm1, %v126_v36, 0.0 }
 0x19b   :  { %v131_v37 = vpop.xlane.xlu0 %130 }
 0x19c   :  { %v132_v38 = vsub.f32 %v126_v36, %v131_v37 }
 0x19e   :  { %v133_v39 = vmul.f32 1.442695, %v132_v38 }
 0x1a0   :  { %256 = vpow2.f32 %v133_v39 }
 0x1aa   :  { %v257_v40 = vpop.eup %256 }
 0x1ab   :  { %135 = vadd.xlane.f32.xlu1 %v257_v40 }
 0x1af   :  { %128 = vadd.xlane.f32.xlu1 %v127_v41 }
 0x238   :  { %v136_v42 = vpop.xlane.xlu1 %135 }
 0x239   :  { %258 = vlog2.f32 %v136_v42 }
 0x23c   :  { %v129_v46 = vpop.xlane.xlu1 %128 }
 0x243   :  { %v259_v43 = vpop.eup %258 }
 0x244   :  { %v138_v44 = vmul.f32 0.6931472, %v259_v43 }
 0x246   :  { %v139_v45 = vadd.f32 %v138_v44, %v131_v37 }
 0x248   :  { %v140_v47 = vsub.f32 %v139_v45, %v129_v46 }
 0x24a   :  { %v142_v48 = vsel %vm141_vm3, %v140_v47, 0.0 }
 0x24b   :  { %143 = vadd.xlane.f32.xlu1 %v142_v48 }
 0x2d8   :  { %v144_v49 = vpop.xlane.xlu1 %143 }
 0x2d9   :  { %v145_v50 = vrot.slane %v144_v49, 4 }
 0x2db   :  { %v146_v51 = vadd.f32 %v145_v50, %v144_v49 }
 0x2dd   :  { %v147_v52 = vrot.slane %v146_v51, 2 }
 0x2df   :  { %v148_v53 = vadd.f32 %v147_v52, %v146_v51 }
 0x2e1   :  { %v149_v54 = vrot.slane %v148_v53, 1 }
 0x2e3   :  { %v150_v55 = vadd.f32 %v149_v54, %v148_v53 }
 0x2e5   :  { %245 = vpush %v150_v55 }
 0x316   :  { %s246_s0 = spop %245 }
 0x317   :  { %153 = sst [smem:[#allocation5]] %s246_s0 }
 0x318   :  { %291 = shalt.err (!%p288_p10)
}
 0x319   :  { %s303_s8 = smov [#allocation5]  }
 0x31a   :  { %161 = dma.smem_to_hbm %s303_s8, 16, %s357_s3, [#allocation4]  }
 0x31b   :  { %294 = dma.done.wait [#allocation4], 16  }
 0x31c   :  { %295 = vsyncadd [#allocation4], 4294967280 }
 0x31d   :  { %165 = sfence }
 0x31e   :  { %166 = vsyncpa [#allocation3], 1 }
 0x31f   :  { %167 = vsyncpa [#allocation4], 1 }

</bundles_post_ra>
